<compile_context>
chip_gen: v7x
topology: tpu7x:2x2x1
jax: 0.10.0
libtpu: 0.0.40
codegen_flags: <defaults>
</compile_context>

<pallas_src>
import functools

import jax
import jax.numpy as jnp
from jax.experimental import pallas as pl
from jax.experimental.pallas import tpu as pltpu


def _round_up(x, m):
    return (x + m - 1) // m * m


@functools.lru_cache(maxsize=1)
def _tpu_config():
    """(vmem_capacity, vmem_limit_bytes, n_col_splits) for the local TPU.

    v7x exposes 64 MiB VMEM per TensorCore and has 2 TCs/chip; v5e/v6e have
    128 MiB and a single TC.  The <=64 MiB test is a heuristic gate for the
    column split (harmless-but-unneeded if it fires on a 1-TC chip)."""
    vmem_cap = 64 * 1024 * 1024  # conservative default (v7x per-TC VMEM)
    try:
        vmem_cap = int(pltpu.get_tpu_info().vmem_capacity_bytes)
    except Exception:
        pass
    n_col = 2 if vmem_cap <= 64 * 1024 * 1024 else 1
    vmem_limit = max(min(vmem_cap - 8 * 1024 * 1024, 112 * 1024 * 1024),
                     32 * 1024 * 1024)
    return vmem_cap, vmem_limit, n_col


def choose_k_tile(in_dim, *, batch=16, w1_bytes=1):
    """Largest K tile whose double-buffered W1 + x tiles fit in ~60% of the
    per-generation VMEM limit.  At the real in_dim ~ 1e6 this picks tens of
    thousands of rows per DMA (vs the old hard-coded 8 MiB budget)."""
    _, vmem_limit, n_col = _tpu_config()
    hc = 256 // n_col
    per_row = 2 * hc * w1_bytes + 2 * batch * 4   # dbuf W1 tile + dbuf f32 x tile
    budget = int(vmem_limit * 0.6)
    tk = max(128, (budget // per_row) // 128 * 128)
    return min(tk, _round_up(in_dim, 128))


# --------------------------------------------------------------------------
# Kernels
# --------------------------------------------------------------------------
def dqn_layer1_kernel(x_ref, w1_ref, y1_ref, acc_ref, *, in_dim, tk):
    """K-streamed layer-1 matmul.

    Grid = (n_col, n_k): axis 0 ("parallel") splits the 256 output columns
    across TensorCores on v7x; axis 1 ("arbitrary") streams (x, W1) K tiles
    into an f32 VMEM accumulator.  W1 tiles arrive int8 (or bf16) and are
    dequantized/cast to bf16 on the VPU (free under DMA slack); the
    per-channel scale is applied later in the epilogue kernel."""
    k = pl.program_id(1)

    @pl.when(k == 0)
    def _init():
        acc_ref[...] = jnp.zeros_like(acc_ref)

    x_t = x_ref[...]
    if in_dim % tk != 0:
        # Last K tile is a partial block of the un-padded x: zero the
        # out-of-range columns (W1's padded K rows are already zero).
        col = jax.lax.broadcasted_iota(jnp.int32, x_t.shape, 1) + k * tk
        x_t = jnp.where(col < in_dim, x_t, 0.0)
    x_t = x_t.astype(jnp.bfloat16)

    # int8 -> f32 -> bf16 dequant of the W1 tile (safe lowering path), then
    # bf16 x bf16 -> f32 on the MXU.
    w_t = w1_ref[...].astype(jnp.float32).astype(jnp.bfloat16)
    acc_ref[...] += jnp.dot(x_t, w_t, preferred_element_type=jnp.float32)

    @pl.when(k == pl.num_programs(1) - 1)
    def _finalize():
        y1_ref[...] = acc_ref[...]


def dqn_epilogue_kernel(y1_ref, s1_ref, b1_ref, w2_ref, b2_ref, w3_ref, b3_ref,
                        w4_ref, b4_ref, o_ref):
    """Layer-1 scale/bias/ReLU + layers 2-4 (all resident in VMEM).
    f32 epilogue math; only the matmul operands drop to bf16."""
    h = jnp.maximum(y1_ref[...] * s1_ref[...] + b1_ref[...], 0.0)
    h = jnp.dot(h.astype(jnp.bfloat16), w2_ref[...],
                preferred_element_type=jnp.float32)
    h = jnp.maximum(h + b2_ref[...], 0.0)
    h = jnp.dot(h.astype(jnp.bfloat16), w3_ref[...],
                preferred_element_type=jnp.float32)
    h = jnp.maximum(h + b3_ref[...], 0.0)
    h = jnp.dot(h.astype(jnp.bfloat16), w4_ref[...],
                preferred_element_type=jnp.float32)
    o_ref[...] = (h + b4_ref[...]).astype(o_ref.dtype)


# --------------------------------------------------------------------------
# Parameter packing (one-time, hoisted out of the per-call path)
# --------------------------------------------------------------------------
def prepare_params(params, in_dim, tk, w1_dtype=jnp.int8):
    """Pack weights once: quantize W1 per-output-channel to int8 (or keep
    bf16), zero-pad its K dim to a multiple of tk, pad the layer-4 width to
    128 lanes, cast small weights to bf16, keep biases/scales as f32 rows.

    NOTE: int8 W1 is a deliberate accuracy trade-off vs the f32 PyTorch
    module (the dominant ~0.5 GB HBM stream shrinks 4x vs f32 / 2x vs bf16);
    pass w1_dtype=jnp.bfloat16 for closer-to-f32 numerics."""
    k_pad = _round_up(in_dim, tk)
    n_actions = params["w4"].shape[1]
    n_pad = _round_up(n_actions, 128)
    h1 = params["w1"].shape[1]

    w1 = params["w1"].astype(jnp.float32)
    if w1_dtype == jnp.int8:
        amax = jnp.max(jnp.abs(w1), axis=0, keepdims=True)        # (1, h1)
        s1 = jnp.where(amax > 0, amax / 127.0, 1.0).astype(jnp.float32)
        w1_q = jnp.clip(jnp.round(w1 / s1), -127, 127).astype(jnp.int8)
    else:
        s1 = jnp.ones((1, h1), jnp.float32)
        w1_q = w1.astype(jnp.bfloat16)
    w1_q = jnp.pad(w1_q, ((0, k_pad - in_dim), (0, 0)))           # zero K pad

    w2 = params["w2"].astype(jnp.bfloat16)
    w3 = params["w3"].astype(jnp.bfloat16)
    w4 = jnp.pad(params["w4"], ((0, 0), (0, n_pad - n_actions))).astype(jnp.bfloat16)

    b1 = params["b1"].reshape(1, -1).astype(jnp.float32)
    b2 = params["b2"].reshape(1, -1).astype(jnp.float32)
    b3 = params["b3"].reshape(1, -1).astype(jnp.float32)
    b4 = jnp.pad(params["b4"], (0, n_pad - n_actions)).reshape(1, -1).astype(jnp.float32)

    return dict(w1=w1_q, s1=s1, b1=b1, w2=w2, b2=b2, w3=w3, b3=b3, w4=w4, b4=b4)


# --------------------------------------------------------------------------
# Forward wrapper
# --------------------------------------------------------------------------
@functools.partial(jax.jit, static_argnames=("tk", "n_actions"))
def dqn_forward(x, prepared, *, tk, n_actions):
    """x: (B, in_dim) float32 (un-padded).  prepared: output of prepare_params."""
    b, in_dim = x.shape
    k_pad, h1 = prepared["w1"].shape
    h2 = prepared["w2"].shape[1]
    h3 = prepared["w3"].shape[1]
    n_pad = prepared["w4"].shape[1]

    # tk consistency with prepare_params (review correctness concern #1).
    assert k_pad % tk == 0 and in_dim <= k_pad and k_pad - in_dim < tk, (
        "tk passed to dqn_forward must match the tk used in prepare_params()")
    n_k = k_pad // tk

    _, vmem_limit, n_col_hw = _tpu_config()
    n_col = n_col_hw if (h1 % (128 * n_col_hw) == 0) else 1       # column split (v7x 2 TCs)
    hc = h1 // n_col

    # Batch only padded when misaligned (bf16 packs 16 sublanes / vreg).
    b_pad = _round_up(max(b, 16), 16)
    if b_pad != b:
        x = jnp.pad(x, ((0, b_pad - b), (0, 0)))

    w1_item = jnp.dtype(prepared["w1"].dtype).itemsize
    flops_a = 2 * b_pad * k_pad * h1
    bytes_a = (k_pad * h1 * w1_item            # W1 stream (dominant)
               + n_col * b_pad * k_pad * 4     # f32 x stream (once per column split)
               + b_pad * h1 * 4)               # y1 writeback

    # ---- Kernel A: K-streamed layer-1 matmul -> y1 (pre-scale/bias) ----
    y1 = pl.pallas_call(
        functools.partial(dqn_layer1_kernel, in_dim=in_dim, tk=tk),
        out_shape=jax.ShapeDtypeStruct((b_pad, h1), jnp.float32),
        grid_spec=pltpu.PrefetchScalarGridSpec(
            num_scalar_prefetch=0,
            grid=(n_col, n_k),
            in_specs=[
                pl.BlockSpec((b_pad, tk), lambda j, k: (0, k)),   # x K tile (f32)
                pl.BlockSpec((tk, hc), lambda j, k: (k, j)),      # W1 K tile (int8/bf16)
            ],
            out_specs=pl.BlockSpec((b_pad, hc), lambda j, k: (0, j)),
            scratch_shapes=[pltpu.VMEM((b_pad, hc), jnp.float32)],  # layer-1 acc
        ),
        compiler_params=pltpu.CompilerParams(
            dimension_semantics=("parallel", "arbitrary"),
            vmem_limit_bytes=vmem_limit),
        cost_estimate=pl.CostEstimate(
            flops=flops_a, transcendentals=0, bytes_accessed=bytes_a),
    )(x, prepared["w1"])

    # ---- Kernel B: scale + bias + ReLU epilogue, layers 2-4 (tiny) ----
    out = pl.pallas_call(
        dqn_epilogue_kernel,
        out_shape=jax.ShapeDtypeStruct((b_pad, n_pad), jnp.float32),
        grid_spec=pltpu.PrefetchScalarGridSpec(
            num_scalar_prefetch=0,
            grid=(1,),
            in_specs=[
                pl.BlockSpec((b_pad, h1), lambda i: (0, 0)),   # y1
                pl.BlockSpec((1, h1), lambda i: (0, 0)),       # s1 (quant scales)
                pl.BlockSpec((1, h1), lambda i: (0, 0)),       # b1
                pl.BlockSpec((h1, h2), lambda i: (0, 0)),      # W2
                pl.BlockSpec((1, h2), lambda i: (0, 0)),       # b2
                pl.BlockSpec((h2, h3), lambda i: (0, 0)),      # W3
                pl.BlockSpec((1, h3), lambda i: (0, 0)),       # b3
                pl.BlockSpec((h3, n_pad), lambda i: (0, 0)),   # W4 (lane-padded)
                pl.BlockSpec((1, n_pad), lambda i: (0, 0)),    # b4
            ],
            out_specs=pl.BlockSpec((b_pad, n_pad), lambda i: (0, 0)),
        ),
        compiler_params=pltpu.CompilerParams(
            dimension_semantics=("arbitrary",)),
    )(y1, prepared["s1"], prepared["b1"], prepared["w2"], prepared["b2"],
      prepared["w3"], prepared["b3"], prepared["w4"], prepared["b4"])

    return out[:b, :n_actions]


# --------------------------------------------------------------------------
# Reference + init
# --------------------------------------------------------------------------
def init_params(key, in_dim, n_actions):
    """Deterministic init mimicking torch.nn.Linear default
    (U[-1/sqrt(fan_in), 1/sqrt(fan_in)]); weights stored (in, out)."""
    dims = [(in_dim, 256), (256, 256), (256, 128), (128, n_actions)]
    params = {}
    for i, (fan_in, fan_out) in enumerate(dims, start=1):
        key, kw, kb = jax.random.split(key, 3)
        bound = 1.0 / jnp.sqrt(float(fan_in))
        params[f"w{i}"] = jax.random.uniform(
            kw, (fan_in, fan_out), jnp.float32, minval=-bound, maxval=bound)
        params[f"b{i}"] = jax.random.uniform(
            kb, (fan_out,), jnp.float32, minval=-bound, maxval=bound)
    return params


def dqn_forward_ref(x, prepared, in_dim, n_actions):
    """Pure-JAX reference emulating the kernel numerics exactly (same
    quantized W1 + per-channel scale, bf16 matmul operands, f32 accumulation,
    f32 bias/ReLU epilogue)."""
    def mm(a, w):
        return jnp.dot(a.astype(jnp.bfloat16).astype(jnp.float32),
                       w.astype(jnp.bfloat16).astype(jnp.float32))
    w1 = prepared["w1"][:in_dim].astype(jnp.float32)     # int8 values: exact in bf16
    y1 = mm(x, w1) * prepared["s1"]
    h = jax.nn.relu(y1 + prepared["b1"])
    h = jax.nn.relu(mm(h, prepared["w2"].astype(jnp.float32)) + prepared["b2"])
    h = jax.nn.relu(mm(h, prepared["w3"].astype(jnp.float32)) + prepared["b3"])
    out = mm(h, prepared["w4"].astype(jnp.float32)) + prepared["b4"]
    return out[:, :n_actions]


if __name__ == "__main__":
    # Small, forward-consistent shapes: grid_size=16 -> state_size=256,
    # action_size=6 (len(lambda_values)), in_dim=262, n_actions=6.
    action_size = 6
    grid_size = 16
    state_size = grid_size * grid_size
    in_dim = state_size + action_size
    n_actions = action_size
    batch = 4

    key = jax.random.PRNGKey(0)
    key, kx = jax.random.split(key)
    x = jax.random.normal(kx, (batch, in_dim), jnp.float32)
    params = init_params(key, in_dim, n_actions)

    # tk=128 exercises the K-streaming / accumulator / partial-block masking
    # path at this toy input dim (3 K steps).  For the real in_dim (~1e6),
    # use tk = choose_k_tile(in_dim): it sizes the tile from the detected
    # generation's VMEM (v7x 64 MiB vs v5e/v6e 128 MiB) and the int8 W1 tile
    # footprint, giving tens of thousands of K rows per DMA.
    tk = 128
    prepared = prepare_params(params, in_dim, tk, w1_dtype=jnp.int8)

    out = dqn_forward(x, prepared, tk=tk, n_actions=n_actions)
    out = jax.block_until_ready(out)

    ref = dqn_forward_ref(x, prepared, in_dim, n_actions)
    assert out.shape == (batch, n_actions), out.shape
    err = float(jnp.max(jnp.abs(out - ref)))
    assert jnp.allclose(out, ref, atol=2e-3, rtol=2e-3), err

    print("KERNEL_OK")
</pallas_src>

<mosaic_0001>
module attributes {stable_mosaic.version = 11 : i64} {
  func.func @dqn_epilogue_kernel(%arg0: i32, %arg1: memref<16x256xf32, #tpu.memory_space<vmem>>, %arg2: memref<1x256xf32, #tpu.memory_space<vmem>>, %arg3: memref<1x256xf32, #tpu.memory_space<vmem>>, %arg4: memref<256x256xbf16, #tpu.memory_space<vmem>>, %arg5: memref<1x256xf32, #tpu.memory_space<vmem>>, %arg6: memref<256x128xbf16, #tpu.memory_space<vmem>>, %arg7: memref<1x128xf32, #tpu.memory_space<vmem>>, %arg8: memref<128x128xbf16, #tpu.memory_space<vmem>>, %arg9: memref<1x128xf32, #tpu.memory_space<vmem>>, %arg10: memref<16x128xf32, #tpu.memory_space<vmem>>) attributes {dimension_semantics = [#tpu.dimension_semantics<arbitrary>], iteration_bounds = array<i64: 1>, scalar_prefetch = 0 : i64, scratch_operands = 0 : i64, tpu.core_type = #tpu.core_type<tc>, window_params = [{pipeline_mode = #tpu.pipeline_mode<synchronous>, transform_indices = @transform_0, window_bounds = array<i64: 16, 256>}, {pipeline_mode = #tpu.pipeline_mode<synchronous>, transform_indices = @transform_1, window_bounds = array<i64: 1, 256>}, {pipeline_mode = #tpu.pipeline_mode<synchronous>, transform_indices = @transform_2, window_bounds = array<i64: 1, 256>}, {pipeline_mode = #tpu.pipeline_mode<synchronous>, transform_indices = @transform_3, window_bounds = array<i64: 256, 256>}, {pipeline_mode = #tpu.pipeline_mode<synchronous>, transform_indices = @transform_4, window_bounds = array<i64: 1, 256>}, {pipeline_mode = #tpu.pipeline_mode<synchronous>, transform_indices = @transform_5, window_bounds = array<i64: 256, 128>}, {pipeline_mode = #tpu.pipeline_mode<synchronous>, transform_indices = @transform_6, window_bounds = array<i64: 1, 128>}, {pipeline_mode = #tpu.pipeline_mode<synchronous>, transform_indices = @transform_7, window_bounds = array<i64: 128, 128>}, {pipeline_mode = #tpu.pipeline_mode<synchronous>, transform_indices = @transform_8, window_bounds = array<i64: 1, 128>}, {pipeline_mode = #tpu.pipeline_mode<synchronous>, transform_indices = @transform_9, window_bounds = array<i64: 16, 128>}]} {
    %c0 = arith.constant 0 : index
    %c0_0 = arith.constant 0 : index
    %0 = vector.load %arg1[%c0, %c0_0] : memref<16x256xf32, #tpu.memory_space<vmem>>, vector<16x256xf32>
    %c0_1 = arith.constant 0 : index
    %c0_2 = arith.constant 0 : index
    %1 = vector.load %arg2[%c0_1, %c0_2] : memref<1x256xf32, #tpu.memory_space<vmem>>, vector<1x256xf32>
    %2 = vector.broadcast %1 : vector<1x256xf32> to vector<16x256xf32>
    %3 = arith.mulf %0, %2 : vector<16x256xf32>
    %c0_3 = arith.constant 0 : index
    %c0_4 = arith.constant 0 : index
    %4 = vector.load %arg3[%c0_3, %c0_4] : memref<1x256xf32, #tpu.memory_space<vmem>>, vector<1x256xf32>
    %5 = vector.broadcast %4 : vector<1x256xf32> to vector<16x256xf32>
    %6 = arith.addf %3, %5 : vector<16x256xf32>
    %cst = arith.constant 0.000000e+00 : f32
    %7 = vector.broadcast %cst : f32 to vector<16x256xf32>
    %8 = arith.maximumf %6, %7 : vector<16x256xf32>
    %9 = arith.truncf %8 : vector<16x256xf32> to vector<16x256xbf16>
    %c0_5 = arith.constant 0 : index
    %c0_6 = arith.constant 0 : index
    %10 = vector.load %arg4[%c0_5, %c0_6] : memref<256x256xbf16, #tpu.memory_space<vmem>>, vector<256x256xbf16>
    %cst_7 = arith.constant dense<0.000000e+00> : vector<16x256xf32>
    %11 = tpu.matmul %9, %10, %cst_7 {dimension_numbers = #tpu.dot_dimension_numbers<[1], [0], [0], [1], [0, 0, 1, 1], [], []>} : vector<16x256xbf16>, vector<256x256xbf16>, vector<16x256xf32> -> vector<16x256xf32>
    %c0_8 = arith.constant 0 : index
    %c0_9 = arith.constant 0 : index
    %12 = vector.load %arg5[%c0_8, %c0_9] : memref<1x256xf32, #tpu.memory_space<vmem>>, vector<1x256xf32>
    %13 = vector.broadcast %12 : vector<1x256xf32> to vector<16x256xf32>
    %14 = arith.addf %11, %13 : vector<16x256xf32>
    %cst_10 = arith.constant 0.000000e+00 : f32
    %15 = vector.broadcast %cst_10 : f32 to vector<16x256xf32>
    %16 = arith.maximumf %14, %15 : vector<16x256xf32>
    %17 = arith.truncf %16 : vector<16x256xf32> to vector<16x256xbf16>
    %c0_11 = arith.constant 0 : index
    %c0_12 = arith.constant 0 : index
    %18 = vector.load %arg6[%c0_11, %c0_12] : memref<256x128xbf16, #tpu.memory_space<vmem>>, vector<256x128xbf16>
    %cst_13 = arith.constant dense<0.000000e+00> : vector<16x128xf32>
    %19 = tpu.matmul %17, %18, %cst_13 {dimension_numbers = #tpu.dot_dimension_numbers<[1], [0], [0], [1], [0, 0, 1, 1], [], []>} : vector<16x256xbf16>, vector<256x128xbf16>, vector<16x128xf32> -> vector<16x128xf32>
    %c0_14 = arith.constant 0 : index
    %c0_15 = arith.constant 0 : index
    %20 = vector.load %arg7[%c0_14, %c0_15] : memref<1x128xf32, #tpu.memory_space<vmem>>, vector<1x128xf32>
    %21 = vector.broadcast %20 : vector<1x128xf32> to vector<16x128xf32>
    %22 = arith.addf %19, %21 : vector<16x128xf32>
    %cst_16 = arith.constant 0.000000e+00 : f32
    %23 = vector.broadcast %cst_16 : f32 to vector<16x128xf32>
    %24 = arith.maximumf %22, %23 : vector<16x128xf32>
    %25 = arith.truncf %24 : vector<16x128xf32> to vector<16x128xbf16>
    %c0_17 = arith.constant 0 : index
    %c0_18 = arith.constant 0 : index
    %26 = vector.load %arg8[%c0_17, %c0_18] : memref<128x128xbf16, #tpu.memory_space<vmem>>, vector<128x128xbf16>
    %cst_19 = arith.constant dense<0.000000e+00> : vector<16x128xf32>
    %27 = tpu.matmul %25, %26, %cst_19 {dimension_numbers = #tpu.dot_dimension_numbers<[1], [0], [0], [1], [0, 0, 1, 1], [], []>} : vector<16x128xbf16>, vector<128x128xbf16>, vector<16x128xf32> -> vector<16x128xf32>
    %c0_20 = arith.constant 0 : index
    %c0_21 = arith.constant 0 : index
    %28 = vector.load %arg9[%c0_20, %c0_21] : memref<1x128xf32, #tpu.memory_space<vmem>>, vector<1x128xf32>
    %29 = vector.broadcast %28 : vector<1x128xf32> to vector<16x128xf32>
    %30 = arith.addf %27, %29 : vector<16x128xf32>
    %c0_22 = arith.constant 0 : index
    %c0_23 = arith.constant 0 : index
    %31 = vector.load %arg10[%c0_22, %c0_23] : memref<16x128xf32, #tpu.memory_space<vmem>>, vector<16x128xf32>
    tpu.vector_store %arg10[%c0_22, %c0_23], %30 {strides = array<i32>} : memref<16x128xf32, #tpu.memory_space<vmem>>, vector<16x128xf32>,
    return
  }
  func.func @transform_0(%arg0: i32) -> (i32, i32) {
    %c0_i32 = arith.constant 0 : i32
    %c0_i32_0 = arith.constant 0 : i32
    %c0_i32_1 = arith.constant 0 : i32
    return %c0_i32, %c0_i32_0 : i32, i32
  }
  func.func @transform_1(%arg0: i32) -> (i32, i32) {
    %c0_i32 = arith.constant 0 : i32
    %c0_i32_0 = arith.constant 0 : i32
    %c0_i32_1 = arith.constant 0 : i32
    return %c0_i32, %c0_i32_0 : i32, i32
  }
  func.func @transform_2(%arg0: i32) -> (i32, i32) {
    %c0_i32 = arith.constant 0 : i32
    %c0_i32_0 = arith.constant 0 : i32
    %c0_i32_1 = arith.constant 0 : i32
    return %c0_i32, %c0_i32_0 : i32, i32
  }
  func.func @transform_3(%arg0: i32) -> (i32, i32) {
    %c0_i32 = arith.constant 0 : i32
    %c0_i32_0 = arith.constant 0 : i32
    %c0_i32_1 = arith.constant 0 : i32
    return %c0_i32, %c0_i32_0 : i32, i32
  }
  func.func @transform_4(%arg0: i32) -> (i32, i32) {
    %c0_i32 = arith.constant 0 : i32
    %c0_i32_0 = arith.constant 0 : i32
    %c0_i32_1 = arith.constant 0 : i32
    return %c0_i32, %c0_i32_0 : i32, i32
  }
  func.func @transform_5(%arg0: i32) -> (i32, i32) {
    %c0_i32 = arith.constant 0 : i32
    %c0_i32_0 = arith.constant 0 : i32
    %c0_i32_1 = arith.constant 0 : i32
    return %c0_i32, %c0_i32_0 : i32, i32
  }
  func.func @transform_6(%arg0: i32) -> (i32, i32) {
    %c0_i32 = arith.constant 0 : i32
    %c0_i32_0 = arith.constant 0 : i32
    %c0_i32_1 = arith.constant 0 : i32
    return %c0_i32, %c0_i32_0 : i32, i32
  }
  func.func @transform_7(%arg0: i32) -> (i32, i32) {
    %c0_i32 = arith.constant 0 : i32
    %c0_i32_0 = arith.constant 0 : i32
    %c0_i32_1 = arith.constant 0 : i32
    return %c0_i32, %c0_i32_0 : i32, i32
  }
  func.func @transform_8(%arg0: i32) -> (i32, i32) {
    %c0_i32 = arith.constant 0 : i32
    %c0_i32_0 = arith.constant 0 : i32
    %c0_i32_1 = arith.constant 0 : i32
    return %c0_i32, %c0_i32_0 : i32, i32
  }
  func.func @transform_9(%arg0: i32) -> (i32, i32) {
    %c0_i32 = arith.constant 0 : i32
    %c0_i32_0 = arith.constant 0 : i32
    %c0_i32_1 = arith.constant 0 : i32
    return %c0_i32, %c0_i32_0 : i32, i32
  }
}

module attributes {stable_mosaic.version = 11 : i64} {
  func.func @dqn_layer1_kernel(%arg0: i32, %arg1: i32, %arg2: memref<16x128xf32, #tpu.memory_space<vmem>>, %arg3: memref<128x128xi8, #tpu.memory_space<vmem>>, %arg4: memref<16x128xf32, #tpu.memory_space<vmem>>, %arg5: memref<16x128xf32, #tpu.memory_space<vmem>>) attributes {dimension_semantics = [#tpu.dimension_semantics<parallel>, #tpu.dimension_semantics<arbitrary>], iteration_bounds = array<i64: 2, 3>, scalar_prefetch = 0 : i64, scratch_operands = 1 : i64, tpu.core_type = #tpu.core_type<tc>, window_params = [{transform_indices = @transform_0, window_bounds = array<i64: 16, 128>}, {transform_indices = @transform_1, window_bounds = array<i64: 128, 128>}, {transform_indices = @transform_2, window_bounds = array<i64: 16, 128>}]} {
    %c0_i32 = arith.constant 0 : i32
    %0 = arith.cmpi eq, %arg1, %c0_i32 : i32
    %1 = arith.extui %0 : i1 to i32
    %c0_i32_0 = arith.constant 0 : i32
    %2 = arith.cmpi ne, %1, %c0_i32_0 : i32
    scf.if %2 {
      %cst_10 = arith.constant 0.000000e+00 : f32
      %23 = vector.broadcast %cst_10 : f32 to vector<16x128xf32>
      %c0_11 = arith.constant 0 : index
      %c0_12 = arith.constant 0 : index
      %24 = vector.load %arg5[%c0_11, %c0_12] : memref<16x128xf32, #tpu.memory_space<vmem>>, vector<16x128xf32>
      tpu.vector_store %arg5[%c0_11, %c0_12], %23 {strides = array<i32>} : memref<16x128xf32, #tpu.memory_space<vmem>>, vector<16x128xf32>,
    } else {
    }
    %c0 = arith.constant 0 : index
    %c0_1 = arith.constant 0 : index
    %3 = vector.load %arg2[%c0, %c0_1] : memref<16x128xf32, #tpu.memory_space<vmem>>, vector<16x128xf32>
    %4 = tpu.iota {dimensions = array<i32: 1>} : vector<16x128xi32>
    %c128_i32 = arith.constant 128 : i32
    %5 = arith.muli %arg1, %c128_i32 : i32
    %6 = vector.broadcast %5 : i32 to vector<16x128xi32>
    %7 = arith.addi %4, %6 : vector<16x128xi32>
    %c262_i32 = arith.constant 262 : i32
    %8 = vector.broadcast %c262_i32 : i32 to vector<16x128xi32>
    %9 = arith.cmpi slt, %7, %8 : vector<16x128xi32>
    %cst = arith.constant 0.000000e+00 : f32
    %10 = vector.broadcast %cst : f32 to vector<16x128xf32>
    %11 = arith.select %9, %3, %10 : vector<16x128xi1>, vector<16x128xf32>
    %12 = arith.truncf %11 : vector<16x128xf32> to vector<16x128xbf16>
    %c0_2 = arith.constant 0 : index
    %c0_3 = arith.constant 0 : index
    %13 = vector.load %arg3[%c0_2, %c0_3] : memref<128x128xi8, #tpu.memory_space<vmem>>, vector<128x128xi8>
    %14 = arith.sitofp %13 : vector<128x128xi8> to vector<128x128xf32>
    %15 = arith.truncf %14 : vector<128x128xf32> to vector<128x128xbf16>
    %c0_4 = arith.constant 0 : index
    %c0_5 = arith.constant 0 : index
    %16 = vector.load %arg5[%c0_4, %c0_5] : memref<16x128xf32, #tpu.memory_space<vmem>>, vector<16x128xf32>
    %cst_6 = arith.constant dense<0.000000e+00> : vector<16x128xf32>
    %17 = tpu.matmul %12, %15, %cst_6 {dimension_numbers = #tpu.dot_dimension_numbers<[1], [0], [0], [1], [0, 0, 1, 1], [], []>} : vector<16x128xbf16>, vector<128x128xbf16>, vector<16x128xf32> -> vector<16x128xf32>
    %18 = arith.addf %16, %17 : vector<16x128xf32>
    %c0_7 = arith.constant 0 : index
    %c0_8 = arith.constant 0 : index
    %19 = vector.load %arg5[%c0_7, %c0_8] : memref<16x128xf32, #tpu.memory_space<vmem>>, vector<16x128xf32>
    tpu.vector_store %arg5[%c0_7, %c0_8], %18 {strides = array<i32>} : memref<16x128xf32, #tpu.memory_space<vmem>>, vector<16x128xf32>,
    %c2_i32 = arith.constant 2 : i32
    %20 = arith.cmpi eq, %arg1, %c2_i32 : i32
    %21 = arith.extui %20 : i1 to i32
    %c0_i32_9 = arith.constant 0 : i32
    %22 = arith.cmpi ne, %21, %c0_i32_9 : i32
    scf.if %22 {
      %c0_10 = arith.constant 0 : index
      %c0_11 = arith.constant 0 : index
      %23 = vector.load %arg5[%c0_10, %c0_11] : memref<16x128xf32, #tpu.memory_space<vmem>>, vector<16x128xf32>
      %c0_12 = arith.constant 0 : index
      %c0_13 = arith.constant 0 : index
      %24 = vector.load %arg4[%c0_12, %c0_13] : memref<16x128xf32, #tpu.memory_space<vmem>>, vector<16x128xf32>
      tpu.vector_store %arg4[%c0_12, %c0_13], %23 {strides = array<i32>} : memref<16x128xf32, #tpu.memory_space<vmem>>, vector<16x128xf32>,
    } else {
    }
    return
  }
  func.func @transform_0(%arg0: i32, %arg1: i32) -> (i32, i32) {
    %c0_i32 = arith.constant 0 : i32
    %c0_i32_0 = arith.constant 0 : i32
    return %c0_i32, %arg1 : i32, i32
  }
  func.func @transform_1(%arg0: i32, %arg1: i32) -> (i32, i32) {
    %c0_i32 = arith.constant 0 : i32
    return %arg1, %arg0 : i32, i32
  }
  func.func @transform_2(%arg0: i32, %arg1: i32) -> (i32, i32) {
    %c0_i32 = arith.constant 0 : i32
    %c0_i32_0 = arith.constant 0 : i32
    return %c0_i32, %arg0 : i32, i32
  }
}

</mosaic_0001>

<bundles_post_ra>
// kernel: dqn_forward.2
= control target key start
LH: loop header
LB: loop body
LE: loop exit
PB: predicated region body
PF: predicated region fallthrough
CT: control target
= control target key end

     0   :  { %7 = vsyncpa [#allocation5], 0  ;;  %s992_s0 = inlined_call_operand.vmem [shape: f32[16,262], index: 0, kind: input, shape index: {}]   ;;  %s993_s1 = inlined_call_operand.hbm [shape: s8[384,256], index: 1, kind: input, shape index: {}]   ;;  %s994_s2 = inlined_call_operand.vmem [shape: f32[16,256], index: 2, kind: output, shape index: {}]  }
   0x1   :  { %9 = vsyncpa [#allocation5 + $0x1], 0  ;;  %s764_s9 = smov 0   ;;  %s766_s10 = smov 0  }
   0x2   :  { %s768_s11 = smov 0   ;;  %s770_s12 = smov 0  }
   0x3   :  { %s772_s13 = smov 0   ;;  %s774_s14 = smov 0  }
   0x4   :  { %s776_s15 = smov 0   ;;  %s778_s16 = smov 0  }
   0x5   :  { %s780_s17 = smov 0   ;;  %s782_s18 = smov 0  }
   0x6   :  { %s784_s19 = smov 0   ;;  %s786_s20 = smov 0  }
   0x7 LB: > { %998 = sst [smem:[#allocation8_spill]] %s720_s15  ;;  %s456_s21 = sadd.s32 4294967295, %s740_s20   ;;  %s740_s20 = sphi %s786_s20, %s15_s20   ;;  %s736_s19 = sphi %s784_s19, %s1021_s19   ;;  %s732_s18 = sphi %s782_s18, %s1020_s18   ;;  %s728_s17 = sphi %s780_s17, %s1019_s17   ;;  %s724_s16 = sphi %s778_s16, %s1018_s16   ;;  %s720_s15 = sphi %s776_s15, %s1010_s15   ;;  %s716_s14 = sphi %s774_s14, %s1009_s14   ;;  %s712_s13 = sphi %s772_s13, %s1017_s13   ;;  %s708_s12 = sphi %s770_s12, %s1016_s12   ;;  %s704_s11 = sphi %s768_s11, %s1015_s11   ;;  %s700_s10 = sphi %s766_s10, %s1014_s10   ;;  %s696_s9 = sphi %s764_s9, %s1013_s9  }
   0x8   : > { %s24_s22 = sadd.s32 1, %s732_s18  ;;  %s27_s23 = sadd.s32 1, %s736_s19 }
   0x9   : > { %p25_p0 = scmp.ge.s32.totalorder %s24_s22, 3  ;;  %s34_s24 = sadd.s32 1, %s720_s15 }
   0xa   : > { %p41_p1 = scmp.ne.s32.totalorder %s720_s15, %s716_s14  ;;  %p42_p2 = scmp.eq.s32.totalorder %s740_s20, 0 }
   0xb   : > { %s1023_s22 = smov (%p25_p0, %s24_s22), 0  ;;  %s1025_s23 = smov (!%p25_p0, %s27_s23), %s736_s19 }
   0xc   : > { %999 = sst [smem:[#allocation9_spill]] %s1023_s22  ;;  %s31_s25 = ssub.s32 %s732_s18, %s1023_s22 }
   0xd   : > { %p29_p3 = scmp.ge.s32.totalorder %s1025_s23, 2  ;;  %p32_p4 = scmp.eq.s32.totalorder %s31_s25, 0 }
   0xe   : > { %p836_p5 = por %p42_p2, %p41_p1  ;;  %s62_s27 = sadd.s32 1, %s712_s13 }
   0xf   : > { %s1027_s23 = smov (%p29_p3, %s1025_s23), 0  ;;  %p69_p6 = scmp.ne.s32.totalorder %s712_s13, %s708_s12 }
  0x10   : > { %1001 = sst [smem:[#allocation10_spill]] %s1027_s23  ;;  %s58_s29 = ssub.s32 %s736_s19, %s1027_s23 }
  0x11   : > { %s844_s28 = scalar_select %p32_p4, %s720_s15, %s34_s24  }
  0x12   : > { %s59_s30 = sor.u32 %s58_s29, %s31_s25  ;;  %p75_p7 = scmp.ne.s32.totalorder %s708_s12, %s704_s11 }
  0x13   : > { %1002 = sst [smem:[#allocation11_spill]] %s844_s28  ;;  %p60_p8 = scmp.eq.s32.totalorder %s59_s30, 0 }
  0x14   : > { %p852_p9 = por %p69_p6, %p42_p2  ;;  %p76_p10 = scmp.eq.s32.totalorder %s456_s21, 0 }
  0x15   : > { %p86_p11 = scmp.eq.s32.totalorder %s58_s29, 0  ;;  %s88_s6 = sadd.s32 1, %s700_s10 }
  0x16   : > { %s859_s4 = scalar_select %p60_p8, %s712_s13, %s62_s27  }
  0x17   : > { %p861_p12 = por %p76_p10, %p75_p7  ;;  %p98_p13 = scmp.ne.s32.totalorder %s700_s10, %s696_s9 }
  0x18   : > { %1004 = sst [smem:[#allocation12_spill]] %s859_s4  ;;  %p99_p0 = scmp.eq.s32.totalorder %s456_s21, 5 }
  0x19   : > { %s867_s7 = scalar_select %p86_p11, %s700_s10, %s88_s6  }
  0x1a   : > { %p873_p1 = por %p99_p0, %p98_p13  ;;  %p459_p2 = scmp.ge.s32.totalorder %s740_s20, 6 }
  0x1c   : > { %s1006_s8 = scalar_select %p873_p1, 1, 0 }
  0x1d   : > { %121 = sbr.rel (%p459_p2) target bundleno = 71 (0x47), region = 16 }
  0x24   : > { %124 = sbr.rel (!%p836_p5) target bundleno = 43 (0x2b), region = 20  ;;  %s126_s11 = sand.u32 (%p836_p5), 1, %s720_s15  }
  0x25   : > { %s461_s24 = sshll.u32 (%p836_p5), %s732_s18, 3  ;;  %s460_s25 = sshll.u32 (%p836_p5), %s126_s11, 4 }
  0x26   : > { %s130_s30 = scalar_lea.vmem (%p836_p5), %s992_s0, %s461_s24  ;;  %s128_s21 = scalar_lea.vmem (%p836_p5), [#allocation3], %s460_s25 }
  0x27   : > { %v160_v0 = vld [vmem:[%s130_s30] sm:$0xff] (%p836_p5)  ;;  %v162_v1 = vld [vmem:[%s130_s30 + $0x18] sm:$0xff] (%p836_p5) }
  0x28   : > { %161 = vst [vmem:[%s128_s21] sm:$0xff] (%p836_p5), %v160_v0  ;;  %163 = vst [vmem:[%s128_s21 + $0x8] sm:$0xff] (%p836_p5), %v162_v1 }
  0x2b PF: > { %s170_s26 = sand.u32 1, %s712_s13   ;;  %s480_s6 = sshll.u32 %s732_s18, 3 }
  0x2c   : > { %s462_s23 = sshll.u32 %s170_s26, 5  ;;  %s180_s22 = sadd.s32 %s736_s19, %s480_s6 }
  0x2d   : > { %s465_s28 = sshll.u32 %s180_s22, 7  ;;  %s174_s11 = scalar_lea.vmem [#allocation4], %s462_s23 }
  0x2e   : > { %s183_s15 = sshll.u32 %s174_s11, 4  ;;  %s891_s24 = scalar_lea.hbm %s993_s1, %s465_s28  ;;  %s893_s15 = int_to_ptr.vmem [resolvable:$true] %s183_s15 }
  0x2f   : > { %s895_s25 = scalar_lea.sflag [#allocation5], %s170_s26  ;;  %s614_s29 = scalar_lea.hbm %s891_s24, 512 }
  0x30   : > { %p615_p3 = scmp.ne.s32.totalorder %s891_s24, %s614_s29  ;;  %s618_s30 = scalar_lea.hbm %s993_s1, 3072 }
  0x31   : > { %p619_p6 = scmp.lt.u32.totalorder %s891_s24, %s993_s1  ;;  %p620_p7 = scmp.lt.u32.totalorder %s618_s30, %s614_s29 }
  0x32   : > { %p616_p4 = pnand %p615_p3, %p852_p9  ;;  %p622_p10 = scmp.lt.u32.totalorder %s614_s29, %s891_s24 }
  0x33   : > { %p621_p8 = por %p620_p7, %p619_p6 }
  0x34   : > { %p617_p5 = pneg %p616_p4 }
  0x35   : > { %p623_p11 = por %p622_p10, %p621_p8 }
  0x37   : > { %p624_p13 = pnand %p623_p11, %p617_p5 }
  0x39   : > { %627 = shalt.err (!%p624_p13)
}
  0x3a   : > { %s628_s21 = scalar_lea.vmem %s893_s15, 512  ;;  %s742_s26 = smov [#allocation4]  }
  0x3b   : > { %p629_p0 = scmp.ne.s32.totalorder %s893_s15, %s628_s21  ;;  %s632_s6 = sshll.u32 %s742_s26, 4  ;;  %s633_s6 = int_to_ptr.vmem [resolvable:$false] %s632_s6 }
  0x3c   : > { %s634_s11 = scalar_lea.vmem %s633_s6, 1024  ;;  %p635_p4 = scmp.lt.s32.totalorder %s893_s15, %s633_s6 }
  0x3d   : > { %p630_p2 = pnand %p629_p0, %p852_p9  ;;  %p636_p1 = scmp.lt.s32.totalorder %s634_s11, %s628_s21 }
  0x3f   : > { %p631_p3 = pneg %p630_p2  ;;  %p637_p6 = por %p636_p1, %p635_p4 }
  0x41   : > { %p638_p7 = pnand %p637_p6, %p631_p3 }
  0x43   : > { %641 = shalt.err (!%p638_p7)
}
  0x44   : > { %s743_s27 = smov 256   ;;  %s744_s29 = smov 128  }
  0x45   : > { %s745_s22 = smov 8  }
  0x46   : > { %510 = dma.hbm_to_vmem [thread:$0]  (%p852_p9), %s891_s24, 512, %s893_s15, %s895_s25, %s743_s27, %s744_s29, %s745_s22  }
  0x47 PF: > { %p466_p5 = scmp.ge.s32.totalorder %s740_s20, 1  ;;  %p191_p8 = scmp.lt.s32.totalorder %s740_s20, 7 }
  0x49   : > { %p192_p10 = pnand %p466_p5, %p191_p8 }
  0x4a   : > { %s198_s23 = sand.u32 (!%p192_p10), 1, %s716_s14   ;;  %s204_s30 = sand.u32 (!%p192_p10), 1, %s708_s12  }
  0x4b   : > { %195 = sbr.rel (%p192_p10) target bundleno = 360 (0x168), region = 62  ;;  %s923_s4 = sshll.u32 (!%p192_p10), %s198_s23, 4 }
  0x4c   : > { %s468_s28 = sshll.u32 (!%p192_p10), %s204_s30, 5  ;;  %s200_s21 = scalar_lea.vmem (!%p192_p10), [#allocation3], %s923_s4 }
  0x4d   : > { %s205_s26 = scalar_lea.sflag (!%p192_p10), [#allocation5], %s204_s30  ;;  %s926_s3 = scalar_lea.vmem (!%p192_p10), [#allocation4], %s468_s28 }
  0x52   : > { %691 = dma.done.wait (%p861_p12), %s205_s26, 512  }
  0x53   : > { %693 = vsyncadd (%p861_p12), %s205_s26, 4294966784  ;;  %s229_s15 = sand.u32 1, %s696_s9   ;;  %p470_p9 = scmp.ne.s32.totalorder %s724_s16, 0 }
  0x54   : > { %s469_s24 = sshll.u32 %s229_s15, 4  ;;  %v746_v2 = vmov (!%p470_p9), 0.0  }
  0x55   : > { %s933_s25 = scalar_lea.vmem [#allocation6], %s469_s24  ;;  %237 = sbr.rel (%p470_p9) target bundleno = 92 (0x5c), region = 74  ;;  %238 = vst [vmem:[#allocation2] sm:$0xff] (!%p470_p9), %v746_v2  ;;  %239 = vst [vmem:[#allocation2 + $0x8] sm:$0xff] (!%p470_p9), %v746_v2 }
  0x5c PF: > { %v251_v3 = vld [vmem:[%s926_s3] sm:$0xff]  ;;  %v747_v4 = vmov 0.0   ;;  %vm748_vm0 = vmmov 0   ;;  %v252_v7 = vld [vmem:[%s926_s3 + $0x8] sm:$0xff]  ;;  %v253_v10 = vld [vmem:[%s926_s3 + $0x10] sm:$0xff]  ;;  %v242_v12 = vlaneseq  ;;  %s471_s9 = sshll.u32 %s724_s16, 7 }
  0x5d   : > { %490 = vmatprep.subr.bf16.mxu0 %v747_v4  ;;  %v255_v5 = vunpack.c.l.s8.bf16 %v251_v3  ;;  %506 = vmatprep.mubr.msk.bf16.mxu0 %vm748_vm0, %v747_v4  ;;  %v256_v6 = vunpack.c.h.s8.bf16 %v251_v3  ;;  %v257_v8 = vunpack.c.l.s8.bf16 %v252_v7  ;;  %v258_v9 = vunpack.c.h.s8.bf16 %v252_v7  ;;  %v254_v14 = vld [vmem:[%s926_s3 + $0x18] sm:$0xff]  ;;  %v240_v20 = vld [vmem:[%s200_s21] sm:$0xff]  ;;  %p475_p12 = scmp.ne.s32.totalorder %s724_s16, 2 }
  0x5e   : > { %v259_v11 = vunpack.c.l.s8.bf16 %v253_v10  ;;  %v260_v13 = vunpack.c.h.s8.bf16 %v253_v10  ;;  %v243_v15 = vand.u32 127, %v242_v12  ;;  %v245_v16 = vstv %s471_s9  ;;  %v241_v21 = vld [vmem:[%s200_s21 + $0x8] sm:$0xff]  ;;  %v263_v23 = vld [vmem:[#allocation2] sm:$0xff] }
  0x5f   : > { %491 = vmatpush3.bf16.msra.mxu0 %v255_v5  ;;  %v261_v17 = vunpack.c.l.s8.bf16 %v254_v14  ;;  %v262_v19 = vunpack.c.h.s8.bf16 %v254_v14  ;;  %v473_v22 = vpack.c.bf16 %v241_v21, %v240_v20  ;;  %v264_v25 = vld [vmem:[#allocation2 + $0x8] sm:$0xff] }
  0x60   : > { %492 = vmatprep.subr.bf16.mxu0 %v747_v4  ;;  %v246_v18 = vadd.s32 %v245_v16, %v243_v15 }
  0x62   : > { %vm247_vm1 = vcmp.lt.s32.totalorder %v246_v18, 262 }
  0x63   : > { %493 = vmatpush3.bf16.msra.mxu0 %v256_v6  ;;  %vm472_vm2 = vmpackc.low %vm247_vm1, %vm247_vm1 }
  0x64   : > { %494 = vmatprep.subr.bf16.mxu0 %v747_v4 }
  0x67   : > { %495 = vmatpush3.bf16.msra.mxu0 %v257_v8 }
  0x68   : > { %496 = vmatprep.subr.bf16.mxu0 %v747_v4 }
  0x6b   : > { %497 = vmatpush3.bf16.msra.mxu0 %v258_v9 }
  0x6c   : > { %498 = vmatprep.subr.bf16.mxu0 %v747_v4 }
  0x6f   : > { %499 = vmatpush3.bf16.msra.mxu0 %v259_v11 }
  0x70   : > { %500 = vmatprep.subr.bf16.mxu0 %v747_v4 }
  0x73   : > { %501 = vmatpush3.bf16.msra.mxu0 %v260_v13 }
  0x74   : > { %502 = vmatprep.subr.bf16.mxu0 %v747_v4 }
  0x77   : > { %503 = vmatpush3.bf16.msra.mxu0 %v261_v17 }
  0x78   : > { %504 = vmatprep.subr.bf16.mxu0 %v747_v4 }
  0x7b   : > { %505 = vmatpush3.bf16.msra.mxu0 %v262_v19 }
  0x7e   : > { %507 = vmatmul.mubr.msk.bf16.vlgmr.msra.gmra.mrb[0].mxu0 %vm472_vm2, %v473_v22 }
 0x150   : > { %313 = sbr.rel (%p475_p12) target bundleno = 351 (0x15f), region = 78 }
 0x151   : > { %v299_v24 = vpop.f32.mrb[0].mxu0 }
 0x152   : > { %v306_v26 = vadd.f32 %v299_v24, %v263_v23  ;;  %v508_v27 = vpop.f32.mrb[1].mxu0 }
 0x153   : > { %v302_v28 = vpop.f32.mrb[2].mxu0 }
 0x154   : > { %308 = vst [vmem:[#allocation2] sm:$0xff] %v306_v26  ;;  %v307_v29 = vadd.f32 %v302_v28, %v264_v25  ;;  %v509_v30 = vpop.f32.mrb[3].mxu0 }
 0x156   : > { %309 = vst [vmem:[#allocation2 + $0x8] sm:$0xff] %v307_v29 }
 0x15b   : > { %v314_v31 = vld [vmem:[#allocation2] sm:$0xff] }
 0x15c   : > { %316 = vst [vmem:[%s933_s25] sm:$0xff] %v314_v31 }
 0x15d   : > { %v315_v32 = vld [vmem:[#allocation2 + $0x8] sm:$0xff] }
 0x15e   : > { %317 = vst [vmem:[%s933_s25 + $0x8] sm:$0xff] %v315_v32 }
 0x15f PF: > { %p1007_p1 = scmp.ne.s32.totalorder %s1006_s8, 0 }
 0x160   : > { %s477_s14 = sshll.u32 (%p1007_p1), %s728_s17, 3 }
 0x161   : > { %324 = sbr.rel (!%p1007_p1) target bundleno = 360 (0x168), region = 82  ;;  %s326_s16 = scalar_lea.vmem (%p1007_p1), %s994_s2, %s477_s14 }
 0x163   : > { %v356_v33 = vld [vmem:[%s933_s25] sm:$0xff] (%p1007_p1) }
 0x164   : > { %357 = vst [vmem:[%s326_s16] sm:$0xff] (%p1007_p1), %v356_v33 }
 0x165   : > { %v358_v34 = vld [vmem:[%s933_s25 + $0x8] sm:$0xff] (%p1007_p1) }
 0x166   : > { %359 = vst [vmem:[%s326_s16 + $0x10] sm:$0xff] (%p1007_p1), %v358_v34 }
 0x168 PF: > { %s15_s20 = sadd.s32 1, %s740_s20   ;;  %s1008_s8 = sld [smem:[#allocation12_spill]] }
 0x169   : > { %p12_p11 = scmp.ge.s32.totalorder %s15_s20, 8   ;;  %s1009_s14 = sld [smem:[#allocation8_spill]] }
 0x16a   : > { %s1010_s15 = sld [smem:[#allocation11_spill]]  ;;  %s1011_s27 = sld [smem:[#allocation9_spill]] }
 0x16b   : > { %s1012_s29 = sld [smem:[#allocation10_spill]]  ;;  %s1013_s9 = smov %s700_s10 }
 0x16c   : > { %s1014_s10 = smov %s867_s7  ;;  %s1015_s11 = smov %s708_s12 }
 0x16d   : > { %s1016_s12 = smov %s712_s13  ;;  %s1018_s16 = smov %s732_s18 }
 0x16e   : > { %s1017_s13 = smov %s1008_s8  ;;  %s1019_s17 = smov %s736_s19 }
 0x16f   :  { %14 = sbr.rel (!%p12_p11) target bundleno = 7 (0x7), region = 160 }
 0x170   : > { %s1020_s18 = smov %s1011_s27 }
 0x171   : > { %s1021_s19 = smov %s1012_s29 }
 0x176   :  { %375 = vsyncpa [#allocation5], 1 }
 0x177   :  { %377 = vsyncpa [#allocation5 + $0x1], 1 }

// kernel: dqn_forward.3
= control target key start
LH: loop header
LB: loop body
LE: loop exit
PB: predicated region body
PF: predicated region fallthrough
CT: control target
= control target key end

     0   :  { %14 = vsyncpa [#allocation3], 0  ;;  %s850_s30 = smov [#allocation2]   ;;  %s1079_s0 = inlined_call_operand.vmem [shape: f32[16,256], index: 0, kind: input, shape index: {}]   ;;  %s1080_s1 = inlined_call_operand.vmem [shape: f32[1,256], index: 1, kind: input, shape index: {}]   ;;  %s1081_s2 = inlined_call_operand.vmem [shape: f32[1,256], index: 2, kind: input, shape index: {}]   ;;  %s1082_s3 = inlined_call_operand.vmem [shape: bf16[256,256], index: 3, kind: input, shape index: {}]   ;;  %s1083_s4 = inlined_call_operand.vmem [shape: f32[1,256], index: 4, kind: input, shape index: {}]   ;;  %s1084_s5 = inlined_call_operand.hbm [shape: bf16[256,128], index: 5, kind: input, shape index: {}]   ;;  %s1085_s6 = inlined_call_operand.vmem [shape: f32[1,128], index: 6, kind: input, shape index: {}]   ;;  %s1086_s7 = inlined_call_operand.vmem [shape: bf16[128,128], index: 7, kind: input, shape index: {}]   ;;  %s1087_s8 = inlined_call_operand.vmem [shape: f32[1,128], index: 8, kind: input, shape index: {}]   ;;  %s1088_s9 = inlined_call_operand.vmem [shape: f32[16,128], index: 9, kind: output, shape index: {}]  }
   0x1   :  { %s30_s10 = sshll.u32 %s850_s30, 4  ;;  %s826_s13 = scalar_lea.hbm %s1084_s5, 2048  ;;  %s31_s10 = int_to_ptr.vmem [resolvable:$true] %s30_s10 }
   0x2   :  { %p827_p0 = scmp.ne.s32.totalorder %s1084_s5, %s826_s13  ;;  %p830_p1 = scmp.lt.u32.totalorder %s826_s13, %s1084_s5 }
   0x4   :  { %p832_p2 = pnand %p830_p1, %p827_p0 }
   0x6   :  { %835 = shalt.err (!%p832_p2)
}
   0x7   :  { %s836_s18 = scalar_lea.vmem %s31_s10, 2048  ;;  %p841_p4 = scmp.lt.s32.totalorder %s31_s10, %s31_s10 }
   0x8   :  { %p837_p3 = scmp.ne.s32.totalorder %s31_s10, %s836_s18  ;;  %p842_p5 = scmp.lt.s32.totalorder %s836_s18, %s836_s18 }
   0xa   :  { %p843_p6 = por %p842_p5, %p841_p4 }
   0xc   :  { %p844_p7 = pnand %p843_p6, %p837_p3 }
   0xe   :  { %847 = shalt.err (!%p844_p7)
}
   0xf   :  { %s851_s19 = smov 64   ;;  %s852_s20 = smov 4  }
  0x10   :  { %36 = dma.hbm_to_vmem [thread:$0]  %s1084_s5, 2048, %s31_s10, [#allocation3], %s851_s19, %s851_s19, %s852_s20  }
  0x11   :  { %848 = dma.done.wait [#allocation3], 2048  }
  0x12   :  { %849 = vsyncadd [#allocation3], 4294965248  ;;  %v754_v0 = vld [vmem:[%s1082_s3 + $0x4] ss:$8 sps:$4 sm:$0xff]   ;;  %v756_v1 = vld [vmem:[%s1082_s3] ss:$8 sps:$4 sm:$0xff]   ;;  %v53_v8 = vlaneseq }
  0x13   :  { %293 = vmatprep.subr.bf16.mxu0 %v754_v0  ;;  %v757_v2 = vld [vmem:[%s1082_s3 + $0x14] ss:$8 sps:$4 sm:$0xff]   ;;  %v759_v3 = vld [vmem:[%s1082_s3 + $0x10] ss:$8 sps:$4 sm:$0xff]   ;;  %v760_v4 = vld [vmem:[%s1082_s3 + $0x24] ss:$8 sps:$4 sm:$0xff]  }
  0x14   :  { %294 = vmatpush1.bf16.msra.mxu0 %v756_v1  ;;  %v762_v5 = vld [vmem:[%s1082_s3 + $0x20] ss:$8 sps:$4 sm:$0xff]   ;;  %v763_v6 = vld [vmem:[%s1082_s3 + $0x34] ss:$8 sps:$4 sm:$0xff]   ;;  %v765_v7 = vld [vmem:[%s1082_s3 + $0x30] ss:$8 sps:$4 sm:$0xff]  }
  0x15   :  { %295 = vmatprep.subr.bf16.mxu0 %v757_v2  ;;  %v766_v9 = vld [vmem:[%s1082_s3 + $0x44] ss:$8 sps:$4 sm:$0xff]   ;;  %v768_v10 = vld [vmem:[%s1082_s3 + $0x40] ss:$8 sps:$4 sm:$0xff]   ;;  %v54_v11 = vshrl.u32 %v53_v8, 7  ;;  %v50_v18 = vld [vmem:[%s1079_s0 + $0x18] sm:$0xff] }
  0x16   :  { %v769_v12 = vld [vmem:[%s1082_s3 + $0x54] ss:$8 sps:$4 sm:$0xff]   ;;  %v771_v13 = vld [vmem:[%s1082_s3 + $0x50] ss:$8 sps:$4 sm:$0xff]   ;;  %v772_v15 = vld [vmem:[%s1082_s3 + $0x64] ss:$8 sps:$4 sm:$0xff]  }
  0x17   :  { %v953_v14 = vsub.s32 1, %v54_v11  ;;  %v774_v16 = vld [vmem:[%s1082_s3 + $0x60] ss:$8 sps:$4 sm:$0xff]   ;;  %v775_v21 = vld [vmem:[%s1082_s3 + $0x74] ss:$8 sps:$4 sm:$0xff]   ;;  %v55_v44 = vsub.s32 0, %v54_v11 }
  0x18   :  { %296 = vmatpush1.bf16.msra.mxu0 %v759_v3  ;;  %v48_v17 = vld [vmem:[%s1079_s0 + $0x8] sm:$0xff]  ;;  %v51_v19 = vld [vmem:[%s1080_s1] sm:$0x3]  ;;  %v777_v25 = vld [vmem:[%s1082_s3 + $0x70] ss:$8 sps:$4 sm:$0xff]   ;;  %vm854_vm0 = vmmov 0  }
  0x19   :  { %297 = vmatprep.subr.bf16.mxu0 %v760_v4  ;;  %v973_v20 = vld [vmem:[%s1081_s2] sm:$0x3]  ;;  %v60_v22 = vrot.slane %v51_v19, %v953_v14  ;;  %v804_v29 = vld [vmem:[#allocation2 + $0x48] sm:$0xff]   ;;  %v806_v37 = vld [vmem:[#allocation2 + $0x50] sm:$0xff]   ;;  %v56_v53 = vrot.slane %v51_v19, %v55_v44 }
  0x1a   :  { %v76_v23 = vrot.slane %v973_v20, %v953_v14  ;;  %v802_v24 = vld [vmem:[#allocation2 + $0x40] sm:$0xff]   ;;  %v805_v33 = vld [vmem:[#allocation2 + $0x8] sm:$0xff]   ;;  %v781_v38 = vld [vmem:[%s1082_s3 + $0x94] ss:$8 sps:$4 sm:$0xff]   ;;  %v72_v58 = vrot.slane %v973_v20, %v55_v44 }
  0x1b   :  { %v64_v26 = vmul.f32 %v60_v22, %v48_v17  ;;  %v66_v27 = vmul.f32 %v60_v22, %v50_v18  ;;  %v803_v28 = vld [vmem:[#allocation2] sm:$0xff]   ;;  %698 = vmatprep.subr.bf16.mxu1 %v802_v24  ;;  %v807_v40 = vld [vmem:[#allocation2 + $0x10] sm:$0xff]   ;;  %v808_v42 = vld [vmem:[#allocation2 + $0x58] sm:$0xff]  }
  0x1c   :  { %298 = vmatpush1.bf16.msra.mxu0 %v762_v5  ;;  %v778_v30 = vld [vmem:[%s1082_s3 + $0x84] ss:$8 sps:$4 sm:$0xff]   ;;  %699 = vmatpush3.bf16.msra.mxu1 %v803_v28  ;;  %v780_v34 = vld [vmem:[%s1082_s3 + $0x80] ss:$8 sps:$4 sm:$0xff]   ;;  %v783_v41 = vld [vmem:[%s1082_s3 + $0x90] ss:$8 sps:$4 sm:$0xff]  }
  0x1d   :  { %299 = vmatprep.subr.bf16.mxu0 %v763_v6  ;;  %v80_v31 = vadd.f32 %v76_v23, %v64_v26  ;;  %v82_v32 = vadd.f32 %v76_v23, %v66_v27  ;;  %700 = vmatprep.subr.bf16.mxu1 %v804_v29  ;;  %v784_v43 = vld [vmem:[%s1082_s3 + $0xa4] ss:$8 sps:$4 sm:$0xff]   ;;  %v809_v45 = vld [vmem:[#allocation2 + $0x18] sm:$0xff]   ;;  %v786_v47 = vld [vmem:[%s1082_s3 + $0xa0] ss:$8 sps:$4 sm:$0xff]  }
  0x1e   :  { %v810_v46 = vld [vmem:[#allocation2 + $0x60] sm:$0xff]   ;;  %v787_v48 = vld [vmem:[%s1082_s3 + $0xb4] ss:$8 sps:$4 sm:$0xff]   ;;  %v812_v50 = vld [vmem:[#allocation2 + $0x68] sm:$0xff]  }
  0x1f   :  { %v84_v35 = vmax.f32 %v80_v31, 0.0  ;;  %v86_v36 = vmax.f32 %v82_v32, 0.0  ;;  %v811_v49 = vld [vmem:[#allocation2 + $0x20] sm:$0xff]   ;;  %v789_v51 = vld [vmem:[%s1082_s3 + $0xb0] ss:$8 sps:$4 sm:$0xff]  }
  0x20   :  { %300 = vmatpush1.bf16.msra.mxu0 %v765_v7  ;;  %701 = vmatpush3.bf16.msra.mxu1 %v805_v33  ;;  %v790_v52 = vld [vmem:[%s1082_s3 + $0xc4] ss:$8 sps:$4 sm:$0xff]   ;;  %v792_v54 = vld [vmem:[%s1082_s3 + $0xc0] ss:$8 sps:$4 sm:$0xff]   ;;  %v49_v56 = vld [vmem:[%s1079_s0 + $0x10] sm:$0xff] }
  0x21   :  { %301 = vmatprep.subr.bf16.mxu0 %v766_v9  ;;  %v88_v39 = vpack.c.bf16 %v86_v36, %v84_v35  ;;  %702 = vmatprep.subr.bf16.mxu1 %v806_v37  ;;  %v47_v55 = vld [vmem:[%s1079_s0] sm:$0xff]  ;;  %v793_v57 = vld [vmem:[%s1082_s3 + $0xd4] ss:$8 sps:$4 sm:$0xff]   ;;  %v65_v60 = vmul.f32 %v56_v53, %v49_v56  ;;  %v795_v61 = vld [vmem:[%s1082_s3 + $0xd0] ss:$8 sps:$4 sm:$0xff]  }
  0x22   :  { %v63_v59 = vmul.f32 %v56_v53, %v47_v55  ;;  %v796_v62 = vld [vmem:[%s1082_s3 + $0xe4] ss:$8 sps:$4 sm:$0xff]   ;;  %v798_v1 = vld [vmem:[%s1082_s3 + $0xe0] ss:$8 sps:$4 sm:$0xff]   ;;  %v799_v2 = vld [vmem:[%s1082_s3 + $0xf4] ss:$8 sps:$4 sm:$0xff]  }
  0x23   :  { %325 = vmatprep.mubr.bf16.mxu0 %v88_v39  ;;  %v81_v0 = vadd.f32 %v72_v58, %v65_v60  ;;  %v801_v5 = vld [vmem:[%s1082_s3 + $0xf0] ss:$8 sps:$4 sm:$0xff]   ;;  %v813_v7 = vld [vmem:[#allocation2 + $0x28] sm:$0xff]   ;;  %v818_v31 = vld [vmem:[%s1086_s7] sm:$0xff]  }
  0x24   :  { %302 = vmatpush1.bf16.msra.mxu0 %v768_v10  ;;  %703 = vmatpush3.bf16.msra.mxu1 %v807_v40  ;;  %v79_v63 = vadd.f32 %v72_v58, %v63_v59  ;;  %v814_v8 = vld [vmem:[#allocation2 + $0x70] sm:$0xff]   ;;  %v816_v10 = vld [vmem:[#allocation2 + $0x78] sm:$0xff]   ;;  %v823_v35 = vld [vmem:[%s1086_s7 + $0x28] sm:$0xff]  }
  0x25   :  { %303 = vmatprep.subr.bf16.mxu0 %v769_v12  ;;  %704 = vmatprep.subr.bf16.mxu1 %v808_v42  ;;  %v85_v4 = vmax.f32 %v81_v0, 0.0  ;;  %v815_v9 = vld [vmem:[#allocation2 + $0x30] sm:$0xff]   ;;  %v817_v11 = vld [vmem:[#allocation2 + $0x38] sm:$0xff]   ;;  %v853_v12 = vmov 0.0   ;;  %v672_v39 = vld [vmem:[%s1085_s6] ss:$0 sm:$0xff] }
  0x26   :  { %v83_v3 = vmax.f32 %v79_v63, 0.0  ;;  %v820_v32 = vld [vmem:[%s1086_s7 + $0x10] sm:$0xff]   ;;  %v821_v33 = vld [vmem:[%s1086_s7 + $0x18] sm:$0xff]  }
  0x27   :  { %v824_v36 = vld [vmem:[%s1086_s7 + $0x30] sm:$0xff]   ;;  %v825_v37 = vld [vmem:[%s1086_s7 + $0x38] sm:$0xff]  }
  0x28   :  { %304 = vmatpush1.bf16.msra.mxu0 %v771_v13  ;;  %705 = vmatpush3.bf16.msra.mxu1 %v809_v45  ;;  %v87_v6 = vpack.c.bf16 %v85_v4, %v83_v3  ;;  %v121_v13 = vld [vmem:[%s1083_s4] sm:$0x3] }
  0x29   :  { %305 = vmatprep.subr.bf16.mxu0 %v772_v15  ;;  %706 = vmatprep.subr.bf16.mxu1 %v810_v46  ;;  %v126_v15 = vrot.slane %v121_v13, %v55_v44 }
  0x2c   :  { %306 = vmatpush1.bf16.msra.mxu0 %v774_v16  ;;  %707 = vmatpush3.bf16.msra.mxu1 %v811_v49  ;;  %v130_v16 = vrot.slane %v121_v13, %v953_v14  ;;  %v819_v14 = vld [vmem:[%s1086_s7 + $0x8] sm:$0xff]  }
  0x2d   :  { %307 = vmatprep.subr.bf16.mxu0 %v775_v21  ;;  %708 = vmatprep.subr.bf16.mxu1 %v812_v50  ;;  %v689_v50 = vld [vmem:[%s1087_s8] ss:$0 sm:$0xff] }
  0x30   :  { %308 = vmatpush1.bf16.msra.mxu0 %v777_v25  ;;  %709 = vmatpush3.bf16.msra.mxu1 %v813_v7 }
  0x31   :  { %309 = vmatprep.subr.bf16.mxu0 %v778_v30  ;;  %710 = vmatprep.subr.bf16.mxu1 %v814_v8 }
  0x34   :  { %310 = vmatpush1.bf16.msra.mxu0 %v780_v34  ;;  %711 = vmatpush3.bf16.msra.mxu1 %v815_v9  ;;  %v822_v34 = vld [vmem:[%s1086_s7 + $0x20] sm:$0xff]  }
  0x35   :  { %311 = vmatprep.subr.bf16.mxu0 %v781_v38  ;;  %712 = vmatprep.subr.bf16.mxu1 %v816_v10 }
  0x38   :  { %312 = vmatpush1.bf16.msra.mxu0 %v783_v41  ;;  %713 = vmatpush3.bf16.msra.mxu1 %v817_v11 }
  0x39   :  { %313 = vmatprep.subr.bf16.mxu0 %v784_v43  ;;  %729 = vmatprep.subr.bf16.mxu1 %v853_v12 }
  0x3c   :  { %314 = vmatpush1.bf16.msra.mxu0 %v786_v47 }
  0x3d   :  { %315 = vmatprep.subr.bf16.mxu0 %v787_v48 }
  0x40   :  { %316 = vmatpush1.bf16.msra.mxu0 %v789_v51 }
  0x41   :  { %317 = vmatprep.subr.bf16.mxu0 %v790_v52 }
  0x44   :  { %318 = vmatpush1.bf16.msra.mxu0 %v792_v54 }
  0x45   :  { %319 = vmatprep.subr.bf16.mxu0 %v793_v57 }
  0x48   :  { %320 = vmatpush1.bf16.msra.mxu0 %v795_v61 }
  0x49   :  { %321 = vmatprep.subr.bf16.mxu0 %v796_v62 }
  0x4c   :  { %322 = vmatpush1.bf16.msra.mxu0 %v798_v1 }
  0x4d   :  { %323 = vmatprep.subr.bf16.mxu0 %v799_v2 }
  0x50   :  { %324 = vmatpush1.bf16.msra.mxu0 %v801_v5 }
  0x53   :  { %326 = vmatmul.mubr.bf16.vlgmr.msra.gmra.mrb[0].mxu0 %v87_v6 }
 0x126   :  { %v327_v17 = vpop.f32.mrb[0].mxu0 }
 0x127   :  { %v328_v18 = vadd.f32 %v327_v17, %v126_v15  ;;  %v329_v19 = vpop.f32.mrb[1].mxu0 }
 0x128   :  { %v330_v20 = vadd.f32 %v329_v19, %v130_v16  ;;  %v331_v21 = vpop.f32.mrb[2].mxu0 }
 0x129   :  { %v332_v22 = vadd.f32 %v331_v21, %v126_v15  ;;  %v333_v23 = vpop.f32.mrb[3].mxu0  ;;  %v336_v25 = vmax.f32 %v328_v18, 0.0 }
 0x12a   :  { %v334_v24 = vadd.f32 %v333_v23, %v130_v16  ;;  %v337_v27 = vmax.f32 %v330_v20, 0.0 }
 0x12b   :  { %v338_v26 = vmax.f32 %v332_v22, 0.0 }
 0x12c   :  { %v339_v28 = vmax.f32 %v334_v24, 0.0 }
 0x12d   :  { %v340_v29 = vpack.c.bf16 %v338_v26, %v336_v25 }
 0x12e   :  { %v341_v30 = vpack.c.bf16 %v339_v28, %v337_v27 }
 0x130   :  { %509 = vmatprep.mubr.bf16.mxu1 %v341_v30 }
 0x131   :  { %510 = vmatmul.mubr.bf16.vlgmr.msra.gmra.mrb[0].mxu1 %v340_v29 }
 0x132   :  { %730 = vmatpush3.bf16.msra.mxu1 %v818_v31  ;;  %745 = vmatprep.mubr.msk.bf16.mxu1 %vm854_vm0, %v853_v12 }
 0x133   :  { %731 = vmatprep.subr.bf16.mxu1 %v853_v12 }
 0x136   :  { %732 = vmatpush3.bf16.msra.mxu1 %v819_v14 }
 0x137   :  { %733 = vmatprep.subr.bf16.mxu1 %v853_v12 }
 0x13a   :  { %734 = vmatpush3.bf16.msra.mxu1 %v820_v32 }
 0x13b   :  { %735 = vmatprep.subr.bf16.mxu1 %v853_v12 }
 0x13e   :  { %736 = vmatpush3.bf16.msra.mxu1 %v821_v33 }
 0x13f   :  { %737 = vmatprep.subr.bf16.mxu1 %v853_v12 }
 0x142   :  { %738 = vmatpush3.bf16.msra.mxu1 %v822_v34 }
 0x143   :  { %739 = vmatprep.subr.bf16.mxu1 %v853_v12 }
 0x146   :  { %740 = vmatpush3.bf16.msra.mxu1 %v823_v35 }
 0x147   :  { %741 = vmatprep.subr.bf16.mxu1 %v853_v12 }
 0x14a   :  { %742 = vmatpush3.bf16.msra.mxu1 %v824_v36 }
 0x14b   :  { %743 = vmatprep.subr.bf16.mxu1 %v853_v12 }
 0x14e   :  { %744 = vmatpush3.bf16.msra.mxu1 %v825_v37 }
 0x204   :  { %v714_v38 = vpop.f32.mrb[0].mxu1 }
 0x205   :  { %v715_v40 = vpop.f32.mrb[1].mxu1 }
 0x206   :  { %v716_v41 = vadd.f32 %v715_v40, %v714_v38  ;;  %v717_v42 = vpop.f32.mrb[2].mxu1 }
 0x207   :  { %v718_v43 = vpop.f32.mrb[3].mxu1 }
 0x208   :  { %v512_v44 = vadd.f32 %v716_v41, %v672_v39  ;;  %v719_v45 = vadd.f32 %v718_v43, %v717_v42 }
 0x20a   :  { %v515_v46 = vadd.f32 %v719_v45, %v672_v39  ;;  %v518_v47 = vmax.f32 %v512_v44, 0.0 }
 0x20c   :  { %v519_v48 = vmax.f32 %v515_v46, 0.0 }
 0x20e   :  { %v520_v49 = vpack.c.bf16 %v519_v48, %v518_v47 }
 0x210   :  { %746 = vmatmul.mubr.bf16.vlgmr.msra.gmra.mrb[4].mxu1 %v520_v49 }
 0x2e3   :  { %v626_v51 = vpop.f32.mrb[4].mxu1 }
 0x2e4   :  { %v627_v52 = vadd.f32 %v689_v50, %v626_v51  ;;  %v747_v53 = vpop.f32.mrb[5].mxu1 }
 0x2e5   :  { %v629_v54 = vpop.f32.mrb[6].mxu1 }
 0x2e6   :  { %633 = vst [vmem:[%s1088_s9] sm:$0xff] %v627_v52  ;;  %v630_v55 = vadd.f32 %v689_v50, %v629_v54  ;;  %v748_v56 = vpop.f32.mrb[7].mxu1 }
 0x2e8   :  { %634 = vst [vmem:[%s1088_s9 + $0x8] sm:$0xff] %v630_v55 }
 0x2e9   :  { %639 = vsyncpa [#allocation3], 1 }

</bundles_post_ra>
